<compile_context>
chip_gen: v7x
topology: tpu7x:2x2x1
jax: 0.10.0
libtpu: 0.0.40
codegen_flags: <defaults>
</compile_context>

<pallas_src>
import jax
import jax.numpy as jnp
from jax.experimental import pallas as pl
from jax.experimental.pallas import tpu as pltpu

MIN_NORM = 1e-15
ARTANH_EPS = 1e-7


def _meta_log_kernel(scal_ref, a_ref, x_ref, o_ref):
    """One (batch, hw-tile) block covering ALL components.

    scal_ref : VMEM (5, comp, 1, 1) f32 per-component scalars
               [k, sqrt_k, 1 - k*|p|^2, max(1-k*|p|^2, MIN)/sqrt_k, k^2*|p|^2]
    a_ref    : VMEM (comp, cc, 1) f32   a = -p (negated manifold point)
    x_ref    : VMEM (1, comp, cc, T)    input slab tile
    o_ref    : VMEM (1, comp, cc, T)    output slab tile
    """
    k = scal_ref[0]            # (comp, 1, 1)
    sqrt_k = scal_ref[1]
    one_m_ka2 = scal_ref[2]    # 1 - k*|a|^2 (unclamped, numerator coeff)
    coeff0 = scal_ref[3]       # == 2 / (sqrt_k * lambda_p)
    k2a2 = scal_ref[4]         # k^2 * |a|^2

    a = a_ref[...]                             # (comp, cc, 1); lane-broadcast
    x = x_ref[0].astype(jnp.float32)           # (comp, cc, T) compute in f32

    # ---- mobius_add(-p, x, k) ----
    x2 = jnp.sum(x * x, axis=1, keepdims=True)          # (comp, 1, T)
    ax = jnp.sum(a * x, axis=1, keepdims=True)          # (comp, 1, T)
    two_k_ax = 2.0 * k * ax
    num_s = 1.0 + two_k_ax + k * x2                     # coefficient of a
    den = 1.0 + two_k_ax + k2a2 * x2
    inv_den = 1.0 / jnp.maximum(den, MIN_NORM)
    sub = (num_s * a + one_m_ka2 * x) * inv_den         # (comp, cc, T)

    # ---- logmap tail: artanh(sqrt_k*|sub|)-scaled direction ----
    sub_norm = jnp.maximum(
        jnp.sqrt(jnp.sum(sub * sub, axis=1, keepdims=True)), MIN_NORM)
    inv_sub_norm = 1.0 / sub_norm
    z = jnp.clip(sqrt_k * sub_norm, -1.0 + ARTANH_EPS, 1.0 - ARTANH_EPS)
    artanh = 0.5 * jnp.log((1.0 + z) / (1.0 - z))       # (comp, 1, T)

    row = coeff0 * artanh * inv_sub_norm                # per-pixel coefficient
    o_ref[0] = (row * sub).astype(o_ref.dtype)


def meta_log_layer(x, location, curvature, *, block_bytes=1 << 20):
    """x: (B, C, H, W) NCHW; location: (comp, cc); curvature: (comp,)."""
    B, C, H, W = x.shape
    comp, cc = location.shape
    assert C == comp * cc
    HW = H * W

    # ---- per-component precompute (tiny; plain JAX, hoisted out of the grid) ----
    k = curvature.astype(jnp.float32).reshape(comp, 1)
    sqrt_k = jnp.sqrt(k)
    loc = location.astype(jnp.float32)
    loc_norm = jnp.maximum(
        jnp.sqrt(jnp.sum(loc * loc, axis=-1, keepdims=True)), MIN_NORM)
    p = jnp.tanh(sqrt_k * loc_norm) * loc / (sqrt_k * loc_norm)   # expmap0(loc, k)
    a = -p                                                        # (comp, cc)
    a2 = jnp.sum(a * a, axis=-1, keepdims=True)                   # (comp, 1)
    one_m_ka2 = 1.0 - k * a2
    coeff0 = jnp.maximum(one_m_ka2, MIN_NORM) / sqrt_k            # 2/(sqrt_k*lam_p)
    k2a2 = k * k * a2
    scal = jnp.stack([k, sqrt_k, one_m_ka2, coeff0, k2a2], axis=0)   # (5, comp, 1)
    scal = scal.reshape(5, comp, 1, 1)
    a_col = a.reshape(comp, cc, 1)

    # ---- slab: pure reshape of NCHW, spatial axis on the lane dimension ----
    xr = x.reshape(B, comp, cc, HW)

    # Tile sizing: ~block_bytes of f32 payload per block, multiple of 128 lanes.
    LANE = 128
    max_lanes = max(LANE, (block_bytes // (C * 4)) // LANE * LANE)
    if HW <= max_lanes:
        tile_hw, hw_padded = HW, HW            # full extent: always legal, no pad
    else:
        # Prefer a 128-multiple divisor of HW (no HBM pad copy).
        tile_hw = 0
        t = max_lanes
        while t >= LANE:
            if HW % t == 0:
                tile_hw = t
                break
            t -= LANE
        if tile_hw:
            hw_padded = HW
        else:
            tile_hw = max_lanes
            hw_padded = pl.cdiv(HW, tile_hw) * tile_hw
            # zero padding is numerically safe (logmap(p, 0, k) is finite)
            xr = jnp.pad(xr, ((0, 0), (0, 0), (0, 0), (0, hw_padded - HW)))

    grid = (B, hw_padded // tile_hw)

    out = pl.pallas_call(
        _meta_log_kernel,
        out_shape=jax.ShapeDtypeStruct((B, comp, cc, hw_padded), x.dtype),
        grid_spec=pltpu.PrefetchScalarGridSpec(
            num_scalar_prefetch=0,
            grid=grid,
            in_specs=[
                pl.BlockSpec((5, comp, 1, 1), lambda b, j: (0, 0, 0, 0)),   # scalars
                pl.BlockSpec((comp, cc, 1), lambda b, j: (0, 0, 0)),        # -p
                pl.BlockSpec((1, comp, cc, tile_hw), lambda b, j: (b, 0, 0, j)),
            ],
            out_specs=pl.BlockSpec((1, comp, cc, tile_hw),
                                   lambda b, j: (b, 0, 0, j)),
        ),
        compiler_params=pltpu.CompilerParams(
            dimension_semantics=("parallel", "parallel")),
    )(scal, a_col, xr)

    if hw_padded != HW:
        out = out[..., :HW]
    return out.reshape(B, C, H, W)


# ---------------- pure-JAX reference (mirrors the torch forward) ----------------
def _expmap0_ref(u, k):
    sqrt_k = jnp.sqrt(k)
    n = jnp.maximum(jnp.linalg.norm(u, axis=-1, keepdims=True), MIN_NORM)
    return jnp.tanh(sqrt_k * n) * u / (sqrt_k * n)


def _logmap_ref(p, x, k):
    sqrt_k = jnp.sqrt(k)
    a = -p
    a2 = jnp.sum(a * a, -1, keepdims=True)
    x2 = jnp.sum(x * x, -1, keepdims=True)
    ax = jnp.sum(a * x, -1, keepdims=True)
    num = (1 + 2 * k * ax + k * x2) * a + (1 - k * a2) * x
    den = jnp.maximum(1 + 2 * k * ax + k * k * a2 * x2, MIN_NORM)
    sub = num / den
    sn = jnp.maximum(jnp.linalg.norm(sub, axis=-1, keepdims=True), MIN_NORM)
    lam = 2.0 / jnp.maximum(1 - k * a2, MIN_NORM)
    z = jnp.clip(sqrt_k * sn, -1 + ARTANH_EPS, 1 - ARTANH_EPS)
    at = 0.5 * jnp.log((1 + z) / (1 - z))
    return (2.0 / (sqrt_k * lam)) * at * sub / sn


def meta_log_layer_ref(x, location, curvature):
    B, C, H, W = x.shape
    comp, cc = location.shape
    outs = []
    for i in range(comp):
        p = _expmap0_ref(location[i], curvature[i])[None, :]
        x_i = x[:, i * cc:(i + 1) * cc]                          # (B, cc, H, W)
        x_i = jnp.transpose(x_i, (0, 3, 2, 1)).reshape(B * W * H, cc)
        y = _logmap_ref(p, x_i, curvature[i])
        outs.append(jnp.transpose(y.reshape(B, W, H, cc), (0, 3, 2, 1)))
    return jnp.concatenate(outs, axis=1)


if __name__ == "__main__":
    key = jax.random.PRNGKey(0)
    kx1, kx2, kl = jax.random.split(key, 3)

    comp, cc = 4, 4
    C = comp * cc
    # Inputs assumed to lie inside the Poincare ball -> keep them small.
    location = 0.05 * jax.random.normal(kl, (comp, cc), dtype=jnp.float32)
    curvature = jnp.array([0.5, 1.0, 1.5, 2.0], dtype=jnp.float32)

    # Case 1: small NCHW input, single full-extent tile per batch.
    x1 = 0.1 * jax.random.normal(kx1, (2, C, 16, 16), dtype=jnp.float32)
    out1 = jax.block_until_ready(meta_log_layer(x1, location, curvature))
    ref1 = meta_log_layer_ref(x1, location, curvature)
    assert out1.shape == x1.shape
    assert jnp.allclose(out1, ref1, rtol=1e-5, atol=1e-5), "mismatch (case 1)"

    # Case 2: force the multi-tile + padding path (tiny block budget, HW not a
    # multiple of 128) to exercise the lane-dense tiled grid and pad handling.
    x2 = 0.1 * jax.random.normal(kx2, (2, C, 8, 20), dtype=jnp.float32)
    out2 = jax.block_until_ready(
        meta_log_layer(x2, location, curvature, block_bytes=2048))
    ref2 = meta_log_layer_ref(x2, location, curvature)
    assert out2.shape == x2.shape
    assert jnp.allclose(out2, ref2, rtol=1e-5, atol=1e-5), "mismatch (case 2)"

    print("KERNEL_OK")
</pallas_src>

<mosaic_0001>
module attributes {stable_mosaic.version = 11 : i64} {
  func.func @_meta_log_kernel(%arg0: i32, %arg1: i32, %arg2: memref<5x4x1x1xf32, #tpu.memory_space<vmem>>, %arg3: memref<4x4x1xf32, #tpu.memory_space<vmem>>, %arg4: memref<1x4x4x256xf32, #tpu.memory_space<vmem>>, %arg5: memref<1x4x4x256xf32, #tpu.memory_space<vmem>>) attributes {dimension_semantics = [#tpu.dimension_semantics<parallel>, #tpu.dimension_semantics<parallel>], iteration_bounds = array<i64: 2, 1>, scalar_prefetch = 0 : i64, scratch_operands = 0 : i64, tpu.core_type = #tpu.core_type<tc>, window_params = [{pipeline_mode = #tpu.pipeline_mode<synchronous>, transform_indices = @transform_0, window_bounds = array<i64: 5, 4, 1, 1>}, {pipeline_mode = #tpu.pipeline_mode<synchronous>, transform_indices = @transform_1, window_bounds = array<i64: 4, 4, 1>}, {transform_indices = @transform_2, window_bounds = array<i64: 1, 4, 4, 256>}, {transform_indices = @transform_3, window_bounds = array<i64: 1, 4, 4, 256>}]} {
    %c0 = arith.constant 0 : index
    %c0_0 = arith.constant 0 : index
    %c0_1 = arith.constant 0 : index
    %c0_2 = arith.constant 0 : index
    %0 = vector.load %arg2[%c0, %c0_0, %c0_1, %c0_2] : memref<5x4x1x1xf32, #tpu.memory_space<vmem>>, vector<1x4x1x1xf32>
    %1 = vector.shape_cast %0 : vector<1x4x1x1xf32> to vector<4x1x1xf32>
    %c1 = arith.constant 1 : index
    %c0_3 = arith.constant 0 : index
    %c0_4 = arith.constant 0 : index
    %c0_5 = arith.constant 0 : index
    %2 = vector.load %arg2[%c1, %c0_3, %c0_4, %c0_5] : memref<5x4x1x1xf32, #tpu.memory_space<vmem>>, vector<1x4x1x1xf32>
    %3 = vector.shape_cast %2 : vector<1x4x1x1xf32> to vector<4x1x1xf32>
    %c2 = arith.constant 2 : index
    %c0_6 = arith.constant 0 : index
    %c0_7 = arith.constant 0 : index
    %c0_8 = arith.constant 0 : index
    %4 = vector.load %arg2[%c2, %c0_6, %c0_7, %c0_8] : memref<5x4x1x1xf32, #tpu.memory_space<vmem>>, vector<1x4x1x1xf32>
    %5 = vector.shape_cast %4 : vector<1x4x1x1xf32> to vector<4x1x1xf32>
    %c3 = arith.constant 3 : index
    %c0_9 = arith.constant 0 : index
    %c0_10 = arith.constant 0 : index
    %c0_11 = arith.constant 0 : index
    %6 = vector.load %arg2[%c3, %c0_9, %c0_10, %c0_11] : memref<5x4x1x1xf32, #tpu.memory_space<vmem>>, vector<1x4x1x1xf32>
    %7 = vector.shape_cast %6 : vector<1x4x1x1xf32> to vector<4x1x1xf32>
    %c4 = arith.constant 4 : index
    %c0_12 = arith.constant 0 : index
    %c0_13 = arith.constant 0 : index
    %c0_14 = arith.constant 0 : index
    %8 = vector.load %arg2[%c4, %c0_12, %c0_13, %c0_14] : memref<5x4x1x1xf32, #tpu.memory_space<vmem>>, vector<1x4x1x1xf32>
    %9 = vector.shape_cast %8 : vector<1x4x1x1xf32> to vector<4x1x1xf32>
    %c0_15 = arith.constant 0 : index
    %c0_16 = arith.constant 0 : index
    %c0_17 = arith.constant 0 : index
    %10 = vector.load %arg3[%c0_15, %c0_16, %c0_17] : memref<4x4x1xf32, #tpu.memory_space<vmem>>, vector<4x4x1xf32>
    %c0_18 = arith.constant 0 : index
    %c0_19 = arith.constant 0 : index
    %c0_20 = arith.constant 0 : index
    %c0_21 = arith.constant 0 : index
    %11 = vector.load %arg4[%c0_18, %c0_19, %c0_20, %c0_21] : memref<1x4x4x256xf32, #tpu.memory_space<vmem>>, vector<1x4x4x256xf32>
    %12 = vector.shape_cast %11 : vector<1x4x4x256xf32> to vector<4x4x256xf32>
    %13 = arith.mulf %12, %12 : vector<4x4x256xf32>
    %cst = arith.constant dense<0.000000e+00> : vector<4x256xf32>
    %14 = vector.multi_reduction <add>, %13, %cst [1] : vector<4x4x256xf32> to vector<4x256xf32>
    %15 = vector.shape_cast %14 : vector<4x256xf32> to vector<4x1x256xf32>
    %16 = vector.broadcast %10 : vector<4x4x1xf32> to vector<4x4x256xf32>
    %17 = arith.mulf %16, %12 : vector<4x4x256xf32>
    %cst_22 = arith.constant dense<0.000000e+00> : vector<4x256xf32>
    %18 = vector.multi_reduction <add>, %17, %cst_22 [1] : vector<4x4x256xf32> to vector<4x256xf32>
    %19 = vector.shape_cast %18 : vector<4x256xf32> to vector<4x1x256xf32>
    %cst_23 = arith.constant 2.000000e+00 : f32
    %20 = vector.broadcast %cst_23 : f32 to vector<4x1x1xf32>
    %21 = arith.mulf %20, %1 : vector<4x1x1xf32>
    %22 = vector.broadcast %21 : vector<4x1x1xf32> to vector<4x1x256xf32>
    %23 = arith.mulf %22, %19 : vector<4x1x256xf32>
    %cst_24 = arith.constant 1.000000e+00 : f32
    %24 = vector.broadcast %cst_24 : f32 to vector<4x1x256xf32>
    %25 = arith.addf %24, %23 : vector<4x1x256xf32>
    %26 = vector.broadcast %1 : vector<4x1x1xf32> to vector<4x1x256xf32>
    %27 = arith.mulf %26, %15 : vector<4x1x256xf32>
    %28 = arith.addf %25, %27 : vector<4x1x256xf32>
    %cst_25 = arith.constant 1.000000e+00 : f32
    %29 = vector.broadcast %cst_25 : f32 to vector<4x1x256xf32>
    %30 = arith.addf %29, %23 : vector<4x1x256xf32>
    %31 = vector.broadcast %9 : vector<4x1x1xf32> to vector<4x1x256xf32>
    %32 = arith.mulf %31, %15 : vector<4x1x256xf32>
    %33 = arith.addf %30, %32 : vector<4x1x256xf32>
    %cst_26 = arith.constant 1.000000e-15 : f32
    %34 = vector.broadcast %cst_26 : f32 to vector<4x1x256xf32>
    %35 = arith.maximumf %33, %34 : vector<4x1x256xf32>
    %cst_27 = arith.constant 1.000000e+00 : f32
    %36 = vector.broadcast %cst_27 : f32 to vector<4x1x256xf32>
    %37 = arith.divf %36, %35 : vector<4x1x256xf32>
    %38 = vector.broadcast %28 : vector<4x1x256xf32> to vector<4x4x256xf32>
    %39 = vector.broadcast %10 : vector<4x4x1xf32> to vector<4x4x256xf32>
    %40 = arith.mulf %38, %39 : vector<4x4x256xf32>
    %41 = vector.broadcast %5 : vector<4x1x1xf32> to vector<4x4x256xf32>
    %42 = arith.mulf %41, %12 : vector<4x4x256xf32>
    %43 = arith.addf %40, %42 : vector<4x4x256xf32>
    %44 = vector.broadcast %37 : vector<4x1x256xf32> to vector<4x4x256xf32>
    %45 = arith.mulf %43, %44 : vector<4x4x256xf32>
    %46 = arith.mulf %45, %45 : vector<4x4x256xf32>
    %cst_28 = arith.constant dense<0.000000e+00> : vector<4x256xf32>
    %47 = vector.multi_reduction <add>, %46, %cst_28 [1] : vector<4x4x256xf32> to vector<4x256xf32>
    %48 = vector.shape_cast %47 : vector<4x256xf32> to vector<4x1x256xf32>
    %49 = math.sqrt %48 : vector<4x1x256xf32>
    %cst_29 = arith.constant 1.000000e-15 : f32
    %50 = vector.broadcast %cst_29 : f32 to vector<4x1x256xf32>
    %51 = arith.maximumf %49, %50 : vector<4x1x256xf32>
    %cst_30 = arith.constant 1.000000e+00 : f32
    %52 = vector.broadcast %cst_30 : f32 to vector<4x1x256xf32>
    %53 = arith.divf %52, %51 : vector<4x1x256xf32>
    %54 = vector.broadcast %3 : vector<4x1x1xf32> to vector<4x1x256xf32>
    %55 = arith.mulf %54, %51 : vector<4x1x256xf32>
    %cst_31 = arith.constant -0.99999988 : f32
    %cst_32 = arith.constant 0.99999988 : f32
    %56 = vector.broadcast %cst_31 : f32 to vector<4x1x256xf32>
    %57 = arith.maximumf %56, %55 : vector<4x1x256xf32>
    %58 = vector.broadcast %cst_32 : f32 to vector<4x1x256xf32>
    %59 = arith.minimumf %58, %57 : vector<4x1x256xf32>
    %cst_33 = arith.constant 1.000000e+00 : f32
    %60 = vector.broadcast %cst_33 : f32 to vector<4x1x256xf32>
    %61 = arith.addf %60, %59 : vector<4x1x256xf32>
    %cst_34 = arith.constant 1.000000e+00 : f32
    %62 = vector.broadcast %cst_34 : f32 to vector<4x1x256xf32>
    %63 = arith.subf %62, %59 : vector<4x1x256xf32>
    %64 = arith.divf %61, %63 : vector<4x1x256xf32>
    %65 = math.log %64 : vector<4x1x256xf32>
    %cst_35 = arith.constant 5.000000e-01 : f32
    %66 = vector.broadcast %cst_35 : f32 to vector<4x1x256xf32>
    %67 = arith.mulf %66, %65 : vector<4x1x256xf32>
    %68 = vector.broadcast %7 : vector<4x1x1xf32> to vector<4x1x256xf32>
    %69 = arith.mulf %68, %67 : vector<4x1x256xf32>
    %70 = arith.mulf %69, %53 : vector<4x1x256xf32>
    %71 = vector.broadcast %70 : vector<4x1x256xf32> to vector<4x4x256xf32>
    %72 = arith.mulf %71, %45 : vector<4x4x256xf32>
    %c0_36 = arith.constant 0 : index
    %c0_37 = arith.constant 0 : index
    %c0_38 = arith.constant 0 : index
    %c0_39 = arith.constant 0 : index
    %73 = vector.load %arg5[%c0_36, %c0_37, %c0_38, %c0_39] : memref<1x4x4x256xf32, #tpu.memory_space<vmem>>, vector<1x4x4x256xf32>
    %74 = vector.shape_cast %73 : vector<1x4x4x256xf32> to vector<4x4x256xf32>
    %75 = vector.shape_cast %72 : vector<4x4x256xf32> to vector<1x4x4x256xf32>
    tpu.vector_store %arg5[%c0_36, %c0_37, %c0_38, %c0_39], %75 {strides = array<i32>} : memref<1x4x4x256xf32, #tpu.memory_space<vmem>>, vector<1x4x4x256xf32>,
    return
  }
  func.func @transform_0(%arg0: i32, %arg1: i32) -> (i32, i32, i32, i32) {
    %c0_i32 = arith.constant 0 : i32
    %c0_i32_0 = arith.constant 0 : i32
    %c0_i32_1 = arith.constant 0 : i32
    %c0_i32_2 = arith.constant 0 : i32
    %c0_i32_3 = arith.constant 0 : i32
    return %c0_i32, %c0_i32_0, %c0_i32_1, %c0_i32_2 : i32, i32, i32, i32
  }
  func.func @transform_1(%arg0: i32, %arg1: i32) -> (i32, i32, i32) {
    %c0_i32 = arith.constant 0 : i32
    %c0_i32_0 = arith.constant 0 : i32
    %c0_i32_1 = arith.constant 0 : i32
    %c0_i32_2 = arith.constant 0 : i32
    return %c0_i32, %c0_i32_0, %c0_i32_1 : i32, i32, i32
  }
  func.func @transform_2(%arg0: i32, %arg1: i32) -> (i32, i32, i32, i32) {
    %c0_i32 = arith.constant 0 : i32
    %c0_i32_0 = arith.constant 0 : i32
    %c0_i32_1 = arith.constant 0 : i32
    return %arg0, %c0_i32, %c0_i32_0, %arg1 : i32, i32, i32, i32
  }
  func.func @transform_3(%arg0: i32, %arg1: i32) -> (i32, i32, i32, i32) {
    %c0_i32 = arith.constant 0 : i32
    %c0_i32_0 = arith.constant 0 : i32
    %c0_i32_1 = arith.constant 0 : i32
    return %arg0, %c0_i32, %c0_i32_0, %arg1 : i32, i32, i32, i32
  }
}

</mosaic_0001>

<bundles_post_ra>
// kernel: tpu_custom_call.1
= control target key start
LH: loop header
LB: loop body
LE: loop exit
PB: predicated region body
PF: predicated region fallthrough
CT: control target
= control target key end

     0   :  { %8 = vsyncpa [#allocation3], 0  ;;  %s2017_s0 = inlined_call_operand.vmem [shape: f32[5,4,1,1], index: 0, kind: input, shape index: {}]   ;;  %s2018_s1 = inlined_call_operand.vmem [shape: f32[4,4,1], index: 1, kind: input, shape index: {}]   ;;  %s2019_s2 = inlined_call_operand.hbm [shape: f32[2,4,4,256], index: 2, kind: input, shape index: {}]   ;;  %s2020_s3 = inlined_call_operand.hbm [shape: f32[2,4,4,256], index: 3, kind: output, shape index: {}]  }
   0x1   :  { %10 = vsyncpa [#allocation3 + $0x1], 0 }
   0x2   :  { %11 = vsyncpa [#allocation4], 0 }
   0x3   :  { %13 = vsyncpa [#allocation4 + $0x1], 0  ;;  %s1452_s12 = smov 0   ;;  %s1454_s13 = smov 0  }
   0x4   :  { %s1456_s14 = smov 0   ;;  %s1458_s15 = smov 0  }
   0x5   :  { %s1460_s16 = smov 0   ;;  %s1462_s17 = smov 0  }
   0x6 LB: > { %s1113_s18 = sadd.s32 4294967295, %s1423_s17   ;;  %s1114_s19 = sadd.s32 4294967294, %s1423_s17   ;;  %s1423_s17 = sphi %s1462_s17, %s19_s17   ;;  %s1419_s16 = sphi %s1460_s16, %s2035_s16   ;;  %s1415_s15 = sphi %s1458_s15, %s2034_s15   ;;  %s1411_s14 = sphi %s1456_s14, %s2033_s14   ;;  %s1407_s13 = sphi %s1454_s13, %s2032_s13   ;;  %s1403_s12 = sphi %s1452_s12, %s2031_s12  }
   0x7   : > { %s31_s20 = sadd.s32 1, %s1419_s16  ;;  %s82_s21 = sadd.s32 1, %s1411_s14 }
   0x8   : > { %p33_p0 = scmp.ge.s32.totalorder %s31_s20, 2  ;;  %p89_p1 = scmp.ne.s32.totalorder %s1411_s14, %s1407_s13 }
   0x9   : > { %p90_p2 = scmp.eq.s32.totalorder %s1423_s17, 0  ;;  %p95_p3 = scmp.ne.s32.totalorder %s1407_s13, %s1403_s12 }
   0xa   : > { %s2037_s20 = smov (%p33_p0, %s31_s20), 0  ;;  %p96_p5 = scmp.eq.s32.totalorder %s1113_s18, 0 }
   0xb   : > { %p1493_p4 = por %p90_p2, %p89_p1  ;;  %s77_s23 = ssub.s32 %s1419_s16, %s2037_s20 }
   0xc   : > { %p121_p6 = scmp.eq.s32.totalorder %s1113_s18, 1  ;;  %p80_p7 = scmp.eq.s32.totalorder %s77_s23, 0 }
   0xd   : > { %p1499_p8 = por %p96_p5, %p95_p3  ;;  %p127_p10 = scmp.eq.s32.totalorder %s1114_s19, 1 }
   0xe   : > { %p1503_p9 = por %p121_p6, %p89_p1  ;;  %p1170_p13 = scmp.lt.s32.totalorder %s1423_s17, 2 }
   0xf   : > { %s1508_s26 = scalar_select %p80_p7, %s1411_s14, %s82_s21  }
  0x10   : > { %s2024_s25 = scalar_select %p1503_p9, 1, 0 }
  0x11   : > { %p1510_p11 = por %p127_p10, %p95_p3  ;;  %s153_s28 = sand.u32 1, %s1411_s14  }
  0x12   : > { %s1117_s29 = sshll.u32 %s153_s28, 5  ;;  %s1156_s30 = sshll.u32 %s1419_s16, 9 }
  0x13   : > { %s2025_s27 = scalar_select %p1510_p11, 1, 0 }
  0x14   : > { %s1521_s6 = scalar_lea.hbm %s2019_s2, %s1156_s30  ;;  %s157_s7 = scalar_lea.vmem [#allocation2], %s1117_s29 }
  0x15   : > { %s166_s8 = sshll.u32 %s157_s7, 4  ;;  %p1527_p0 = pnand %p1170_p13, %p1493_p4  ;;  %s1523_s8 = int_to_ptr.vmem [resolvable:$true] %s166_s8 }
  0x16   : > { %s1532_s10 = scalar_lea.sflag [#allocation3], %s153_s28  ;;  %s1311_s11 = scalar_lea.hbm %s1521_s6, 512 }
  0x17   : > { %p1312_p2 = scmp.ne.s32.totalorder %s1521_s6, %s1311_s11  ;;  %p1313_p3 = pneg %p1527_p0 }
  0x18   : > { %s1316_s21 = scalar_lea.hbm %s2019_s2, 1024  ;;  %p1317_p4 = scmp.lt.u32.totalorder %s1521_s6, %s2019_s2 }
  0x19   : > { %p1314_p5 = pnand %p1313_p3, %p1312_p2  ;;  %p1318_p7 = scmp.lt.u32.totalorder %s1316_s21, %s1311_s11 }
  0x1a   : > { %p1320_p13 = scmp.lt.u32.totalorder %s1311_s11, %s1521_s6 }
  0x1b   : > { %p1315_p6 = pneg %p1314_p5  ;;  %p1319_p10 = por %p1318_p7, %p1317_p4 }
  0x1d   : > { %p1321_p12 = por %p1320_p13, %p1319_p10 }
  0x1f   : > { %p1322_p1 = pnand %p1321_p12, %p1315_p6 }
  0x21   : > { %1325 = shalt.err (!%p1322_p1)
}
  0x22   : > { %s1326_s28 = scalar_lea.vmem %s1523_s8, 512  ;;  %s1425_s29 = smov [#allocation2]  }
  0x23   : > { %p1327_p2 = scmp.ne.s32.totalorder %s1523_s8, %s1326_s28  ;;  %s1331_s30 = sshll.u32 %s1425_s29, 4  ;;  %s1332_s30 = int_to_ptr.vmem [resolvable:$false] %s1331_s30 }
  0x24   : > { %s1333_s4 = scalar_lea.vmem %s1332_s30, 1024  ;;  %p1334_p9 = scmp.lt.s32.totalorder %s1523_s8, %s1332_s30 }
  0x25   : > { %p1329_p5 = pnand %p1327_p2, %p1313_p3  ;;  %p1335_p4 = scmp.lt.s32.totalorder %s1333_s4, %s1326_s28 }
  0x27   : > { %p1330_p11 = pneg %p1329_p5  ;;  %p1336_p7 = por %p1335_p4, %p1334_p9 }
  0x29   : > { %p1337_p10 = pnand %p1336_p7, %p1330_p11 }
  0x2b   : > { %1340 = shalt.err (!%p1337_p10)
}
  0x2c   : > { %s1426_s5 = smov 128   ;;  %s1427_s7 = smov 8  }
  0x2d   : > { %1165 = dma.hbm_to_vmem [thread:$0]  (!%p1527_p0), %s1521_s6, 512, %s1523_s8, %s1532_s10, %s1426_s5, %s1426_s5, %s1427_s7  }
  0x2e   : > { %p174_p12 = scmp.lt.s32.totalorder %s1423_s17, 3  ;;  %p2027_p1 = scmp.ge.s32.totalorder %s1423_s17, 1 }
  0x30   : > { %p175_p3 = pnand %p2027_p1, %p174_p12 }
  0x31   : > { %s1564_s11 = sand.u32 (!%p175_p3), 1, %s1407_s13  }
  0x32   : > { %178 = sbr.rel (%p175_p3) target bundleno = 335 (0x14f), region = 32  ;;  %s1121_s18 = sshll.u32 (!%p175_p3), %s1564_s11, 5 }
  0x33   : > { %s181_s19 = scalar_lea.sflag (!%p175_p3), [#allocation3], %s1564_s11  ;;  %s1570_s21 = scalar_lea.vmem (!%p175_p3), [#allocation2], %s1121_s18 }
  0x39   : > { %1394 = dma.done.wait (%p1499_p8), %s181_s19, 512  }
  0x3a   : > { %1396 = vsyncadd (%p1499_p8), %s181_s19, 4294966784  ;;  %v1428_v0 = vmov 0   ;;  %v235_v1 = vld [vmem:[%s2018_s1 + $0x8] sm:$0xf]  ;;  %v233_v2 = vld [vmem:[%s2018_s1] sm:$0xf] }
  0x3b   : > { %1226 = vset.pattern.permute.xlu1 %v1428_v0  ;;  %1225 = vset.pattern.permute.xlu0 %v1428_v0  ;;  %v236_v3 = vld [vmem:[%s2018_s1 + $0xc] sm:$0xf]  ;;  %v234_v4 = vld [vmem:[%s2018_s1 + $0x4] sm:$0xf]  ;;  %v210_v5 = vld [vmem:[%s2017_s0 + $0x1] sm:$0x1] }
  0x3c   : > { %326 = vperm.xlu1 %1226, %v235_v1   ;;  %316 = vperm.xlu0 %1225, %v233_v2   ;;  %v209_v6 = vld [vmem:[%s2017_s0] sm:$0x1]  ;;  %v411_v7 = vmul.f32 2.0, %v210_v5  ;;  %v212_v9 = vld [vmem:[%s2017_s0 + $0x3] sm:$0x1]  ;;  %v1649_v29 = vld [vmem:[%s1570_s21 + $0x8] sm:$0xff] }
  0x3d   : > { %v410_v8 = vmul.f32 2.0, %v209_v6  ;;  %v211_v10 = vld [vmem:[%s2017_s0 + $0x2] sm:$0x1]  ;;  %v413_v11 = vmul.f32 2.0, %v212_v9  ;;  %v1136_v13 = vld [vmem:[%s2017_s0 + $0x11] sm:$0x1]  ;;  %v242_v31 = vmul.f32 %v1649_v29, %v1649_v29 }
  0x3e   : > { %v412_v12 = vmul.f32 2.0, %v211_v10  ;;  %v1135_v14 = vld [vmem:[%s2017_s0 + $0x10] sm:$0x1]  ;;  %v1138_v15 = vld [vmem:[%s2017_s0 + $0x13] sm:$0x1]  ;;  %v1652_v30 = vld [vmem:[%s1570_s21] sm:$0xff] }
  0x3f   : > { %v1137_v16 = vld [vmem:[%s2017_s0 + $0x12] sm:$0x1]  ;;  %v1140_v17 = vld [vmem:[%s2017_s0 + $0x9] ss:$0 sm:$0xff]  ;;  %v1139_v18 = vld [vmem:[%s2017_s0 + $0x8] ss:$0 sm:$0xff]  ;;  %v241_v32 = vmul.f32 %v1652_v30, %v1652_v30  ;;  %v250_v37 = vcombine.high %v242_v31, %v242_v31 }
  0x40   : > { %331 = vperm.xlu1 %1226, %v236_v3   ;;  %321 = vperm.xlu0 %1225, %v234_v4   ;;  %v1142_v19 = vld [vmem:[%s2017_s0 + $0xb] ss:$0 sm:$0xff]  ;;  %v1141_v20 = vld [vmem:[%s2017_s0 + $0xa] ss:$0 sm:$0xff]  ;;  %v1124_v21 = vld [vmem:[%s2017_s0 + $0x5] sm:$0x1] }
  0x41   : > { %v1123_v22 = vld [vmem:[%s2017_s0 + $0x4] sm:$0x1]  ;;  %v1126_v23 = vld [vmem:[%s2017_s0 + $0x7] sm:$0x1]  ;;  %v1125_v24 = vld [vmem:[%s2017_s0 + $0x6] sm:$0x1]  ;;  %v249_v38 = vcombine.high %v241_v32, %v241_v32 }
  0x42   : > { %v1132_v25 = vld [vmem:[%s2017_s0 + $0xd] sm:$0x1]  ;;  %v1131_v26 = vld [vmem:[%s2017_s0 + $0xc] sm:$0x1]  ;;  %v1134_v27 = vld [vmem:[%s2017_s0 + $0xf] sm:$0x1] }
  0x43   : > { %v1133_v28 = vld [vmem:[%s2017_s0 + $0xe] sm:$0x1]  ;;  %v1659_v33 = vld [vmem:[%s1570_s21 + $0x18] sm:$0xff]  ;;  %v1662_v34 = vld [vmem:[%s1570_s21 + $0x10] sm:$0xff]  ;;  %vm257_vm0 = vcmask 1043456   ;;  %s1948_s21 = scalar_lea.vmem [#allocation5], %s1121_s18 }
  0x44   : > { %425 = vperm.xlu1 %1226, %v411_v7   ;;  %416 = vperm.xlu0 %1225, %v410_v8   ;;  %v244_v35 = vmul.f32 %v1659_v33, %v1659_v33  ;;  %v243_v36 = vmul.f32 %v1662_v34, %v1662_v34  ;;  %v272_v41 = vsel %vm257_vm0, %v242_v31, 0.0  ;;  %v279_v42 = vsel %vm257_vm0, %v250_v37, 0.0  ;;  %s1157_s18 = sshll.u32 %s1415_s15, 9  ;;  %s1026_s28 = sshll.u32 %s1948_s21, 4  ;;  %s1967_s28 = int_to_ptr.vmem [resolvable:$true] %s1026_s28 }
  0x45   : > { %v258_v43 = vsel %vm257_vm0, %v241_v32, 0.0  ;;  %v265_v44 = vsel %vm257_vm0, %v249_v38, 0.0  ;;  %v273_v49 = vrot.slane %v272_v41, 4  ;;  %v280_v50 = vrot.slane %v279_v42, 4  ;;  %s1965_s30 = scalar_lea.hbm %s2020_s3, %s1157_s18  ;;  %s1011_s4 = scalar_lea.sflag [#allocation4], %s1564_s11 }
  0x46   : > { %v252_v39 = vcombine.high %v244_v35, %v244_v35  ;;  %v251_v40 = vcombine.high %v243_v36, %v243_v36  ;;  %v300_v45 = vsel %vm257_vm0, %v244_v35, 0.0  ;;  %v286_v47 = vsel %vm257_vm0, %v243_v36, 0.0  ;;  %s1341_s5 = scalar_lea.vmem %s1967_s28, 512  ;;  %p2028_p9 = scmp.ne.s32.totalorder %s2024_s25, 0 }
  0x47   : > { %v259_v51 = vrot.slane %v258_v43, 4  ;;  %v266_v52 = vrot.slane %v265_v44, 4  ;;  %v301_v53 = vrot.slane %v300_v45, 4  ;;  %v287_v55 = vrot.slane %v286_v47, 4  ;;  %p1342_p8 = scmp.ne.s32.totalorder %s1967_s28, %s1341_s5  ;;  %s1429_s15 = smov [#allocation5]  }
  0x48   : > { %443 = vperm.xlu1 %1226, %v413_v11   ;;  %434 = vperm.xlu0 %1225, %v412_v12   ;;  %v307_v46 = vsel %vm257_vm0, %v252_v39, 0.0  ;;  %v293_v48 = vsel %vm257_vm0, %v251_v40, 0.0  ;;  %v274_v57 = vadd.f32 %v273_v49, %v272_v41  ;;  %v281_v58 = vadd.f32 %v280_v50, %v279_v42  ;;  %s1345_s7 = sshll.u32 %s1429_s15, 4  ;;  %s1346_s7 = int_to_ptr.vmem [resolvable:$false] %s1345_s7 }
  0x49   : > { %v308_v54 = vrot.slane %v307_v46, 4  ;;  %v294_v56 = vrot.slane %v293_v48, 4  ;;  %v260_v59 = vadd.f32 %v259_v51, %v258_v43  ;;  %v267_v60 = vadd.f32 %v266_v52, %v265_v44  ;;  %p1343_p11 = pnand %p1342_p8, %p2028_p9  ;;  %s1347_s19 = scalar_lea.vmem %s1346_s7, 1024 }
  0x4a   : > { %v302_v61 = vadd.f32 %v301_v53, %v300_v45  ;;  %v288_v63 = vadd.f32 %v287_v55, %v286_v47  ;;  %v275_v1 = vrot.slane %v274_v57, 2  ;;  %v282_v2 = vrot.slane %v281_v58, 2  ;;  %p1348_p6 = scmp.lt.s32.totalorder %s1967_s28, %s1346_s7  ;;  %p1349_p13 = scmp.lt.s32.totalorder %s1347_s19, %s1341_s5 }
  0x4b   : > { %v309_v62 = vadd.f32 %v308_v54, %v307_v46  ;;  %v295_v0 = vadd.f32 %v294_v56, %v293_v48  ;;  %v261_v3 = vrot.slane %v260_v59, 2  ;;  %v268_v4 = vrot.slane %v267_v60, 2  ;;  %p1344_p0 = pneg %p1343_p11 }
  0x4c   : > { %529 = vperm.xlu1 %1226, %v1136_v13   ;;  %520 = vperm.xlu0 %1225, %v1135_v14   ;;  %v289_v7 = vrot.slane %v288_v63, 2  ;;  %v283_v11 = vadd.f32 %v282_v2, %v281_v58  ;;  %v339_v31 = vcombine.high %v1649_v29, %v1649_v29  ;;  %v341_v35 = vcombine.high %v1659_v33, %v1659_v33  ;;  %p1350_p2 = por %p1349_p13, %p1348_p6 }
  0x4d   : > { %v296_v8 = vrot.slane %v295_v0, 2  ;;  %v262_v12 = vadd.f32 %v261_v3, %v260_v59  ;;  %v269_v13 = vadd.f32 %v268_v4, %v267_v60 }
  0x4e   : > { %p1351_p5 = pnand %p1350_p2, %p1344_p0 }
  0x50   : > { %547 = vperm.xlu1 %1226, %v1138_v15   ;;  %538 = vperm.xlu0 %1225, %v1137_v16   ;;  %v290_v16 = vadd.f32 %v289_v7, %v288_v63 }
  0x54   : > { %477 = vperm.xlu1 %1226, %v210_v5   ;;  %468 = vperm.xlu0 %1225, %v209_v6   ;;  %v303_v5 = vrot.slane %v302_v61, 2  ;;  %v310_v6 = vrot.slane %v309_v62, 2 }
  0x56   : > { %v304_v14 = vadd.f32 %v303_v5, %v302_v61  ;;  %v311_v15 = vadd.f32 %v310_v6, %v309_v62 }
  0x58   : > { %495 = vperm.xlu1 %1226, %v212_v9   ;;  %486 = vperm.xlu0 %1225, %v211_v10   ;;  %v419_v9 = vlaneseq  ;;  %v276_v10 = vadd.f32 %v275_v1, %v274_v57 }
  0x5c   : > { %627 = vperm.xlu1 %1226, %v1140_v17   ;;  %623 = vperm.xlu0 %1225, %v1139_v18   ;;  %v297_v17 = vadd.f32 %v296_v8, %v295_v0  ;;  %v420_v18 = vshrl.u32 %v419_v9, 7 }
  0x5e   : > { %v1682_v32 = vsub.s32 0, %v420_v18 }
  0x60   : > { %635 = vperm.xlu1 %1226, %v1142_v19   ;;  %631 = vperm.xlu0 %1225, %v1141_v20   ;;  %v277_v19 = vrot.slane %v276_v10, 1  ;;  %v284_v20 = vrot.slane %v283_v11, 1 }
  0x62   : > { %v1690_v38 = vadd.f32 %v277_v19, %v276_v10  ;;  %v1692_v39 = vadd.f32 %v284_v20, %v283_v11 }
  0x64   : > { %825 = vperm.xlu1 %1226, %v1124_v21   ;;  %816 = vperm.xlu0 %1225, %v1123_v22   ;;  %v263_v21 = vrot.slane %v262_v12, 1  ;;  %v270_v22 = vrot.slane %v269_v13, 1 }
  0x66   : > { %v1694_v40 = vadd.f32 %v263_v21, %v262_v12  ;;  %v1696_v41 = vadd.f32 %v270_v22, %v269_v13 }
  0x68   : > { %843 = vperm.xlu1 %1226, %v1126_v23   ;;  %834 = vperm.xlu0 %1225, %v1125_v24   ;;  %v338_v23 = vcombine.high %v1652_v30, %v1652_v30  ;;  %v340_v24 = vcombine.high %v1662_v34, %v1662_v34 }
  0x6c   : > { %941 = vperm.xlu1 %1226, %v1132_v25   ;;  %932 = vperm.xlu0 %1225, %v1131_v26   ;;  %v305_v25 = vrot.slane %v304_v14, 1  ;;  %v312_v26 = vrot.slane %v311_v15, 1 }
  0x6e   : > { %v1704_v46 = vadd.f32 %v305_v25, %v304_v14  ;;  %v1706_v47 = vadd.f32 %v312_v26, %v311_v15 }
  0x70   : > { %959 = vperm.xlu1 %1226, %v1134_v27   ;;  %950 = vperm.xlu0 %1225, %v1133_v28   ;;  %v291_v27 = vrot.slane %v290_v16, 1  ;;  %v298_v28 = vrot.slane %v297_v17, 1 }
  0x72   : > { %v1708_v48 = vadd.f32 %v291_v27, %v290_v16  ;;  %v1710_v49 = vadd.f32 %v298_v28, %v297_v17 }
  0xbb   : > { %v1686_v36 = vpop.permute.xlu1 %326  ;;  %v1688_v37 = vpop.permute.xlu0 %316 }
  0xbc   : > { %v346_v42 = vmul.f32 %v1688_v37, %v1652_v30  ;;  %v347_v43 = vmul.f32 %v338_v23, %v1688_v37  ;;  %v350_v44 = vmul.f32 %v1686_v36, %v1662_v34  ;;  %v351_v45 = vmul.f32 %v340_v24, %v1686_v36 }
  0xbe   : > { %v354_v50 = vsel %vm257_vm0, %v346_v42, 0.0  ;;  %v361_v51 = vsel %vm257_vm0, %v347_v43, 0.0  ;;  %v382_v52 = vsel %vm257_vm0, %v350_v44, 0.0  ;;  %v389_v53 = vsel %vm257_vm0, %v351_v45, 0.0 }
  0xbf   : > { %v1716_v54 = vpop.permute.xlu1 %331  ;;  %v1718_v55 = vpop.permute.xlu0 %321  ;;  %v355_v56 = vrot.slane %v354_v50, 4  ;;  %v362_v57 = vrot.slane %v361_v51, 4  ;;  %v383_v58 = vrot.slane %v382_v52, 4  ;;  %v390_v59 = vrot.slane %v389_v53, 4 }
  0xc0   : > { %v348_v60 = vmul.f32 %v1718_v55, %v1649_v29  ;;  %v349_v61 = vmul.f32 %v339_v31, %v1718_v55  ;;  %v352_v62 = vmul.f32 %v1716_v54, %v1659_v33  ;;  %v353_v63 = vmul.f32 %v341_v35, %v1716_v54 }
  0xc1   : > { %v356_v0 = vadd.f32 %v355_v56, %v354_v50  ;;  %v363_v1 = vadd.f32 %v362_v57, %v361_v51  ;;  %v384_v2 = vadd.f32 %v383_v58, %v382_v52  ;;  %v391_v3 = vadd.f32 %v390_v59, %v389_v53 }
  0xc2   : > { %v368_v4 = vsel %vm257_vm0, %v348_v60, 0.0  ;;  %v375_v5 = vsel %vm257_vm0, %v349_v61, 0.0  ;;  %v396_v6 = vsel %vm257_vm0, %v352_v62, 0.0  ;;  %v403_v7 = vsel %vm257_vm0, %v353_v63, 0.0 }
  0xc3   : > { %v369_v8 = vrot.slane %v368_v4, 4  ;;  %v376_v9 = vrot.slane %v375_v5, 4  ;;  %v426_v10 = vpop.permute.xlu1 %425  ;;  %v357_v11 = vrot.slane %v356_v0, 2  ;;  %v364_v12 = vrot.slane %v363_v1, 2  ;;  %v417_v13 = vpop.permute.xlu0 %416 }
  0xc4   : > { %v431_v14 = vrot.slane %v426_v10, %v1682_v32  ;;  %v422_v15 = vrot.slane %v417_v13, %v1682_v32  ;;  %v397_v16 = vrot.slane %v396_v6, 4  ;;  %v404_v17 = vrot.slane %v403_v7, 4 }
  0xc5   : > { %v370_v18 = vadd.f32 %v369_v8, %v368_v4  ;;  %v377_v19 = vadd.f32 %v376_v9, %v375_v5  ;;  %v358_v20 = vadd.f32 %v357_v11, %v356_v0  ;;  %v365_v21 = vadd.f32 %v364_v12, %v363_v1 }
  0xc6   : > { %v398_v22 = vadd.f32 %v397_v16, %v396_v6  ;;  %v405_v23 = vadd.f32 %v404_v17, %v403_v7  ;;  %v385_v24 = vrot.slane %v384_v2, 2  ;;  %v392_v25 = vrot.slane %v391_v3, 2 }
  0xc7   : > { %v371_v26 = vrot.slane %v370_v18, 2  ;;  %v378_v27 = vrot.slane %v377_v19, 2  ;;  %v359_v28 = vrot.slane %v358_v20, 1  ;;  %v366_v31 = vrot.slane %v365_v21, 1  ;;  %v444_v35 = vpop.permute.xlu1 %443  ;;  %v435_v42 = vpop.permute.xlu0 %434 }
  0xc8   : > { %v399_v43 = vrot.slane %v398_v22, 2  ;;  %v406_v44 = vrot.slane %v405_v23, 2  ;;  %v449_v45 = vrot.slane %v444_v35, %v1682_v32  ;;  %v386_v50 = vadd.f32 %v385_v24, %v384_v2 }
  0xc9   : > { %v372_v51 = vadd.f32 %v371_v26, %v370_v18  ;;  %v379_v52 = vadd.f32 %v378_v27, %v377_v19  ;;  %v360_v53 = vadd.f32 %v359_v28, %v358_v20  ;;  %v367_v56 = vadd.f32 %v366_v31, %v365_v21 }
  0xca   : > { %v400_v57 = vadd.f32 %v399_v43, %v398_v22  ;;  %v407_v58 = vadd.f32 %v406_v44, %v405_v23  ;;  %v387_v59 = vrot.slane %v386_v50, 1  ;;  %v393_v60 = vadd.f32 %v392_v25, %v391_v3 }
  0xcb   : > { %v373_v61 = vrot.slane %v372_v51, 1  ;;  %v380_v62 = vrot.slane %v379_v52, 1  ;;  %v450_v63 = vmul.f32 %v422_v15, %v360_v53  ;;  %v451_v0 = vmul.f32 %v422_v15, %v367_v56  ;;  %v530_v1 = vpop.permute.xlu1 %529  ;;  %v521_v4 = vpop.permute.xlu0 %520 }
  0xcc   : > { %v401_v5 = vrot.slane %v400_v57, 1  ;;  %v408_v6 = vrot.slane %v407_v58, 1  ;;  %v388_v7 = vadd.f32 %v387_v59, %v386_v50  ;;  %v394_v8 = vrot.slane %v393_v60, 1 }
  0xcd   : > { %v374_v9 = vadd.f32 %v373_v61, %v372_v51  ;;  %v381_v2 = vadd.f32 %v380_v62, %v379_v52  ;;  %v1733_v10 = vadd.f32 1.0, %v450_v63  ;;  %v1735_v11 = vadd.f32 1.0, %v451_v0 }
  0xce   : > { %v402_v12 = vadd.f32 %v401_v5, %v400_v57  ;;  %v409_v13 = vadd.f32 %v408_v6, %v407_v58  ;;  %v395_v16 = vadd.f32 %v394_v8, %v393_v60  ;;  %v440_v3 = vrot.slane %v435_v42, %v1682_v32 }
  0xcf   : > { %v452_v17 = vmul.f32 %v431_v14, %v374_v9  ;;  %v453_v18 = vmul.f32 %v431_v14, %v381_v2  ;;  %v535_v15 = vrot.slane %v530_v1, %v1682_v32  ;;  %v526_v19 = vrot.slane %v521_v4, %v1682_v32  ;;  %v548_v20 = vpop.permute.xlu1 %547  ;;  %v539_v21 = vpop.permute.xlu0 %538 }
  0xd0   : > { %v456_v22 = vmul.f32 %v449_v45, %v402_v12  ;;  %v457_v23 = vmul.f32 %v449_v45, %v409_v13  ;;  %v454_v24 = vmul.f32 %v440_v3, %v388_v7  ;;  %v455_v25 = vmul.f32 %v440_v3, %v395_v16 }
  0xd1   : > { %v460_v26 = vadd.f32 1.0, %v452_v17  ;;  %v461_v27 = vadd.f32 1.0, %v453_v18  ;;  %v556_v28 = vmul.f32 %v535_v15, %v1690_v38  ;;  %v557_v31 = vmul.f32 %v535_v15, %v1692_v39 }
  0xd2   : > { %v464_v35 = vadd.f32 1.0, %v456_v22  ;;  %v465_v42 = vadd.f32 1.0, %v457_v23  ;;  %v462_v43 = vadd.f32 1.0, %v454_v24  ;;  %v1742_v14 = vadd.f32 1.0, %v455_v25 }
  0xd3   : > { %v564_v44 = vadd.f32 %v556_v28, %v460_v26  ;;  %v565_v50 = vadd.f32 %v557_v31, %v461_v27  ;;  %v554_v51 = vmul.f32 %v526_v19, %v1694_v40  ;;  %v555_v52 = vmul.f32 %v526_v19, %v1696_v41  ;;  %v478_v45 = vpop.permute.xlu1 %477  ;;  %v469_v53 = vpop.permute.xlu0 %468 }
  0xd4   : > { %v553_v56 = vrot.slane %v548_v20, %v1682_v32  ;;  %v544_v57 = vrot.slane %v539_v21, %v1682_v32  ;;  %v483_v58 = vrot.slane %v478_v45, %v1682_v32  ;;  %v474_v59 = vrot.slane %v469_v53, %v1682_v32 }
  0xd5   : > { %v572_v60 = vmax.f32 %v564_v44, 1e-15  ;;  %v573_v61 = vmax.f32 %v565_v50, 1e-15  ;;  %v562_v62 = vadd.f32 %v554_v51, %v1733_v10  ;;  %v563_v63 = vadd.f32 %v555_v52, %v1735_v11 }
  0xd6   : > { %v560_v0 = vmul.f32 %v553_v56, %v1704_v46  ;;  %v561_v1 = vmul.f32 %v553_v56, %v1706_v47  ;;  %v558_v4 = vmul.f32 %v544_v57, %v1708_v48  ;;  %v559_v5 = vmul.f32 %v544_v57, %v1710_v49 }
  0xd7   : > { %1231 = vrcp.f32 %v572_v60  ;;  %v570_v6 = vmax.f32 %v562_v62, 1e-15  ;;  %v571_v7 = vmax.f32 %v563_v63, 1e-15  ;;  %v504_v8 = vmul.f32 %v483_v58, %v1690_v38  ;;  %v496_v9 = vpop.permute.xlu1 %495  ;;  %v487_v2 = vpop.permute.xlu0 %486 }
  0xd8   : > { %1233 = vrcp.f32 %v573_v61  ;;  %v568_v12 = vadd.f32 %v560_v0, %v464_v35  ;;  %v569_v13 = vadd.f32 %v561_v1, %v465_v42  ;;  %v566_v16 = vadd.f32 %v558_v4, %v462_v43 }
  0xd9   : > { %1235 = vrcp.f32 %v570_v6  ;;  %v567_v3 = vadd.f32 %v559_v5, %v1742_v14  ;;  %v505_v17 = vmul.f32 %v483_v58, %v1692_v39  ;;  %v512_v18 = vadd.f32 %v504_v8, %v460_v26 }
  0xda   : > { %1237 = vrcp.f32 %v571_v7  ;;  %v576_v15 = vmax.f32 %v568_v12, 1e-15  ;;  %v577_v19 = vmax.f32 %v569_v13, 1e-15  ;;  %v574_v20 = vmax.f32 %v566_v16, 1e-15 }
  0xdb   : > { %v575_v21 = vmax.f32 %v567_v3, 1e-15  ;;  %v513_v22 = vadd.f32 %v505_v17, %v461_v27  ;;  %v502_v38 = vmul.f32 %v474_v59, %v1694_v40  ;;  %v503_v23 = vmul.f32 %v474_v59, %v1696_v41  ;;  %v628_v24 = vpop.permute.xlu1 %627  ;;  %v624_v25 = vpop.permute.xlu0 %623 }
  0xdc   : > { %1239 = vrcp.f32 %v576_v15  ;;  %v501_v28 = vrot.slane %v496_v9, %v1682_v32  ;;  %v492_v31 = vrot.slane %v487_v2, %v1682_v32  ;;  %v596_v44 = vmul.f32 %v512_v18, %v1718_v55 }
  0xdd   : > { %1241 = vrcp.f32 %v577_v19  ;;  %v510_v39 = vadd.f32 %v502_v38, %v1733_v10  ;;  %v511_v26 = vadd.f32 %v503_v23, %v1735_v11  ;;  %v597_v51 = vmul.f32 %v513_v22, %v1718_v55 }
  0xde   : > { %1243 = vrcp.f32 %v574_v20  ;;  %v508_v27 = vmul.f32 %v501_v28, %v1704_v46  ;;  %v509_v40 = vmul.f32 %v501_v28, %v1706_v47  ;;  %v506_v41 = vmul.f32 %v492_v31, %v1708_v48 }
  0xdf   : > { %1245 = vrcp.f32 %v575_v21  ;;  %v507_v50 = vmul.f32 %v492_v31, %v1710_v49  ;;  %v639_v52 = vmul.f32 %v628_v24, %v1649_v29  ;;  %v636_v45 = vpop.permute.xlu1 %635  ;;  %v594_v56 = vmul.f32 %v510_v39, %v1688_v37  ;;  %v632_v59 = vpop.permute.xlu0 %631 }
  0xe0   : > { %v516_v10 = vadd.f32 %v508_v27, %v464_v35  ;;  %v517_v53 = vadd.f32 %v509_v40, %v465_v42  ;;  %v514_v11 = vadd.f32 %v506_v41, %v462_v43  ;;  %v595_v47 = vmul.f32 %v511_v26, %v1688_v37 }
  0xe1   : > { %v1232_v57 = vpop.eup %1231  ;;  %v647_v58 = vcombine.high %v639_v52, %v639_v52  ;;  %v656_v46 = vadd.f32 %v639_v52, %v596_v44  ;;  %v638_v48 = vmul.f32 %v624_v25, %v1652_v30  ;;  %v515_v49 = vadd.f32 %v507_v50, %v1742_v14 }
  0xe2   : > { %v1234_v60 = vpop.eup %1233  ;;  %v600_v55 = vmul.f32 %v516_v10, %v1716_v54  ;;  %v601_v29 = vmul.f32 %v517_v53, %v1716_v54  ;;  %v641_v35 = vmul.f32 %v636_v45, %v1659_v33  ;;  %v598_v30 = vmul.f32 %v514_v11, %v1686_v36 }
  0xe3   : > { %v1236_v42 = vpop.eup %1235  ;;  %v657_v43 = vadd.f32 %v647_v58, %v597_v51  ;;  %v1779_v61 = vmul.f32 %v1232_v57, %v656_v46  ;;  %v646_v62 = vcombine.high %v638_v48, %v638_v48  ;;  %v654_v63 = vadd.f32 %v638_v48, %v594_v56 }
  0xe4   : > { %v1238_v0 = vpop.eup %1237  ;;  %v649_v37 = vcombine.high %v641_v35, %v641_v35  ;;  %v660_v1 = vadd.f32 %v641_v35, %v600_v55  ;;  %v640_v4 = vmul.f32 %v632_v59, %v1662_v34  ;;  %v599_v8 = vmul.f32 %v515_v49, %v1686_v36 }
  0xe5   : > { %v1783_v14 = vmul.f32 %v1234_v60, %v657_v43  ;;  %v672_v54 = vmul.f32 %v1779_v61, %v1779_v61  ;;  %v655_v5 = vadd.f32 %v646_v62, %v595_v47  ;;  %v1787_v33 = vmul.f32 %v1236_v42, %v654_v63 }
  0xe6   : > { %v1240_v6 = vpop.eup %1239  ;;  %v661_v7 = vadd.f32 %v649_v37, %v601_v29  ;;  %v648_v9 = vcombine.high %v640_v4, %v640_v4  ;;  %v658_v2 = vadd.f32 %v640_v4, %v598_v30 }
  0xe7   : > { %v1242_v12 = vpop.eup %1241  ;;  %v673_v13 = vmul.f32 %v1783_v14, %v1783_v14  ;;  %v692_v34 = vsel %vm257_vm0, %v672_v54, 0.0  ;;  %v1793_v16 = vmul.f32 %v1238_v0, %v655_v5  ;;  %v670_v3 = vmul.f32 %v1787_v33, %v1787_v33 }
  0xe8   : > { %v1244_v17 = vpop.eup %1243  ;;  %v693_v18 = vrot.slane %v692_v34, 4  ;;  %v1797_v15 = vmul.f32 %v1240_v6, %v660_v1  ;;  %v1799_v19 = vmul.f32 %v1242_v12, %v661_v7  ;;  %v659_v36 = vadd.f32 %v648_v9, %v599_v8 }
  0xe9   : > { %v1246_v20 = vpop.eup %1245  ;;  %v699_v21 = vsel %vm257_vm0, %v673_v13, 0.0  ;;  %v671_v22 = vmul.f32 %v1793_v16, %v1793_v16  ;;  %v678_v38 = vsel %vm257_vm0, %v670_v3, 0.0  ;;  %v1805_v23 = vmul.f32 %v1244_v17, %v658_v2 }
  0xea   : > { %v694_v24 = vadd.f32 %v693_v18, %v692_v34  ;;  %v700_v25 = vrot.slane %v699_v21, 4  ;;  %v679_v28 = vrot.slane %v678_v38, 4  ;;  %v676_v31 = vmul.f32 %v1797_v15, %v1797_v15 }
  0xeb   : > { %v685_v39 = vsel %vm257_vm0, %v671_v22, 0.0  ;;  %v677_v26 = vmul.f32 %v1799_v19, %v1799_v19  ;;  %v1812_v44 = vmul.f32 %v1246_v20, %v659_v36  ;;  %v674_v27 = vmul.f32 %v1805_v23, %v1805_v23 }
  0xec   : > { %v695_v40 = vrot.slane %v694_v24, 2  ;;  %v701_v41 = vadd.f32 %v700_v25, %v699_v21  ;;  %v680_v50 = vadd.f32 %v679_v28, %v678_v38  ;;  %v686_v51 = vrot.slane %v685_v39, 4 }
  0xed   : > { %v720_v52 = vsel %vm257_vm0, %v676_v31, 0.0  ;;  %v727_v45 = vsel %vm257_vm0, %v677_v26, 0.0  ;;  %v675_v10 = vmul.f32 %v1812_v44, %v1812_v44  ;;  %v706_v53 = vsel %vm257_vm0, %v674_v27, 0.0 }
  0xee   : > { %v696_v11 = vadd.f32 %v695_v40, %v694_v24  ;;  %v702_v56 = vrot.slane %v701_v41, 2  ;;  %v681_v57 = vrot.slane %v680_v50, 2  ;;  %v687_v58 = vadd.f32 %v686_v51, %v685_v39  ;;  %v826_v24 = vpop.permute.xlu1 %825  ;;  %v817_v40 = vpop.permute.xlu0 %816 }
  0xef   : > { %v721_v46 = vrot.slane %v720_v52, 4  ;;  %v728_v47 = vrot.slane %v727_v45, 4  ;;  %v707_v48 = vrot.slane %v706_v53, 4  ;;  %v713_v59 = vsel %vm257_vm0, %v675_v10, 0.0 }
  0xf0   : > { %v697_v60 = vrot.slane %v696_v11, 1  ;;  %v703_v49 = vadd.f32 %v702_v56, %v701_v41  ;;  %v682_v55 = vadd.f32 %v681_v57, %v680_v50  ;;  %v688_v29 = vrot.slane %v687_v58, 2 }
  0xf1   : > { %v722_v35 = vadd.f32 %v721_v46, %v720_v52  ;;  %v729_v42 = vadd.f32 %v728_v47, %v727_v45  ;;  %v708_v43 = vadd.f32 %v707_v48, %v706_v53  ;;  %v714_v62 = vrot.slane %v713_v59, 4 }
  0xf2   : > { %v698_v63 = vadd.f32 %v697_v60, %v696_v11  ;;  %v704_v0 = vrot.slane %v703_v49, 1  ;;  %v683_v37 = vrot.slane %v682_v55, 1  ;;  %v689_v1 = vadd.f32 %v688_v29, %v687_v58 }
  0xf3   : > { %v723_v30 = vrot.slane %v722_v35, 2  ;;  %v730_v4 = vrot.slane %v729_v42, 2  ;;  %v709_v54 = vrot.slane %v708_v43, 2  ;;  %v715_v5 = vadd.f32 %v714_v62, %v713_v59 }
  0xf4   : > { %v705_v6 = vadd.f32 %v704_v0, %v703_v49  ;;  %v690_v7 = vrot.slane %v689_v1, 1  ;;  %1247 = vrsqrt.f32 %v698_v63  ;;  %v684_v13 = vadd.f32 %v683_v37, %v682_v55 }
  0xf5   : > { %v724_v8 = vadd.f32 %v723_v30, %v722_v35  ;;  %v731_v9 = vadd.f32 %v730_v4, %v729_v42  ;;  %v710_v2 = vadd.f32 %v709_v54, %v708_v43  ;;  %v716_v12 = vrot.slane %v715_v5, 2  ;;  %v844_v4 = vpop.permute.xlu1 %843 }
  0xf6   : > { %v1822_v34 = vadd.f32 %v690_v7, %v689_v1  ;;  %1249 = vrsqrt.f32 %v705_v6  ;;  %vm750_vm1 = vcmp.eq.f32.partialorder %v698_v63, inf  ;;  %vm752_vm2 = vcmp.eq.f32.partialorder %v698_v63, 0.0 }
  0xf7   : > { %v725_v3 = vrot.slane %v724_v8, 1  ;;  %v732_v17 = vrot.slane %v731_v9, 1  ;;  %v717_v18 = vadd.f32 %v716_v12, %v715_v5  ;;  %v711_v21 = vrot.slane %v710_v2, 1 }
  0xf8   : > { %1251 = vrsqrt.f32 %v684_v13  ;;  %v753_v39 = vand.u32 2147483648, %v698_v63  ;;  %v831_v26 = vrot.slane %v826_v24, %v1682_v32  ;;  %vm757_vm3 = vcmp.eq.f32.partialorder %v705_v6, inf }
  0xf9   : > { %v1824_v36 = vadd.f32 %v725_v3, %v724_v8  ;;  %v1826_v20 = vadd.f32 %v732_v17, %v731_v9  ;;  %v718_v22 = vrot.slane %v717_v18, 1  ;;  %1253 = vrsqrt.f32 %v1822_v34 }
  0xfa   : > { %v1830_v38 = vadd.f32 %v711_v21, %v710_v2  ;;  %vm759_vm4 = vcmp.eq.f32.partialorder %v705_v6, 0.0  ;;  %v760_v51 = vand.u32 2147483648, %v705_v6  ;;  %vm736_vm5 = vcmp.eq.f32.partialorder %v684_v13, inf }
  0xfb   : > { %1255 = vrsqrt.f32 %v1824_v36  ;;  %v1833_v28 = vadd.f32 %v718_v22, %v717_v18  ;;  %vm738_vm6 = vcmp.eq.f32.partialorder %v684_v13, 0.0  ;;  %v739_v10 = vand.u32 2147483648, %v684_v13 }
  0xfc   : > { %1257 = vrsqrt.f32 %v1826_v20  ;;  %vm743_vm7 = vcmp.eq.f32.partialorder %v1822_v34, inf  ;;  %vm745_vm8 = vcmp.eq.f32.partialorder %v1822_v34, 0.0  ;;  %v746_v11 = vand.u32 2147483648, %v1822_v34 }
  0xfd   : > { %1259 = vrsqrt.f32 %v1830_v38  ;;  %v822_v56 = vrot.slane %v817_v40, %v1682_v32  ;;  %vm778_vm9 = vcmp.eq.f32.partialorder %v1824_v36, inf  ;;  %vm780_vm10 = vcmp.eq.f32.partialorder %v1824_v36, 0.0 }
  0xfe   : > { %v1248_v25 = vpop.eup %1247  ;;  %1261 = vrsqrt.f32 %v1833_v28  ;;  %v781_v49 = vand.u32 2147483648, %v1824_v36  ;;  %vm785_vm11 = vcmp.eq.f32.partialorder %v1826_v20, inf  ;;  %vm787_vm12 = vcmp.eq.f32.partialorder %v1826_v20, 0.0 }
  0xff   : > { %v749_v31 = vmul.f32 %v1248_v25, %v698_v63  ;;  %v788_v30 = vand.u32 2147483648, %v1826_v20  ;;  %v849_v18 = vrot.slane %v844_v4, %v1682_v32  ;;  %vm764_vm13 = vcmp.eq.f32.partialorder %v1830_v38, inf }
 0x100   : > { %v1250_v41 = vpop.eup %1249  ;;  %vm766_vm14 = vcmp.eq.f32.partialorder %v1830_v38, 0.0  ;;  %v767_v25 = vand.u32 2147483648, %v1830_v38  ;;  %vm771_vm15 = vcmp.eq.f32.partialorder %v1833_v28, inf  ;;  %vm773_vm0 = vcmp.eq.f32.partialorder %v1833_v28, 0.0 }
 0x101   : > { %v751_v27 = vsel %vm750_vm1, %v698_v63, %v749_v31  ;;  %v756_v52 = vmul.f32 %v1250_v41, %v705_v6  ;;  %v835_v41 = vpop.permute.xlu0 %834 }
 0x102   : > { %v1837_v50 = vsel %vm752_vm2, %v753_v39, %v751_v27  ;;  %v1252_v53 = vpop.eup %1251 }
 0x103   : > { %v792_v45 = vmax.f32 %v1837_v50, 1e-15  ;;  %v1254_v57 = vpop.eup %1253  ;;  %v758_v58 = vsel %vm757_vm3, %v705_v6, %v756_v52  ;;  %v735_v47 = vmul.f32 %v1252_v53, %v684_v13  ;;  %v774_v53 = vand.u32 2147483648, %v1833_v28 }
 0x104   : > { %v1852_v59 = vsel %vm759_vm4, %v760_v51, %v758_v58  ;;  %v742_v60 = vmul.f32 %v1254_v57, %v1822_v34 }
 0x105   : > { %v1848_v46 = vmul.f32 %v831_v26, %v792_v45  ;;  %v1256_v48 = vpop.eup %1255  ;;  %v793_v29 = vmax.f32 %v1852_v59, 1e-15  ;;  %v737_v42 = vsel %vm736_vm5, %v684_v13, %v735_v47  ;;  %v840_v47 = vrot.slane %v835_v41, %v1682_v32 }
 0x106   : > { %v1258_v55 = vpop.eup %1257  ;;  %v777_v43 = vmul.f32 %v1256_v48, %v1824_v36  ;;  %v1862_v62 = vsel %vm738_vm6, %v739_v10, %v737_v42  ;;  %v744_v63 = vsel %vm743_vm7, %v1822_v34, %v742_v60 }
 0x107   : > { %v1145_v35 = vclamps-f32 %v1848_v46, 0.9999999  ;;  %v784_v0 = vmul.f32 %v1258_v55, %v1826_v20  ;;  %v853_v37 = vmul.f32 %v831_v26, %v793_v29  ;;  %v1875_v54 = vsel %vm745_vm8, %v746_v11, %v744_v63  ;;  %v1260_v8 = vpop.eup %1259 }
 0x108   : > { %v790_v5 = vmax.f32 %v1862_v62, 1e-15  ;;  %v779_v6 = vsel %vm778_vm9, %v1824_v36, %v777_v43  ;;  %v791_v2 = vmax.f32 %v1875_v54, 1e-15  ;;  %v1262_v13 = vpop.eup %1261  ;;  %v763_v39 = vmul.f32 %v1260_v8, %v1830_v38 }
 0x109   : > { %v884_v1 = vsub.f32 1.0, %v1145_v35  ;;  %v786_v7 = vsel %vm785_vm11, %v1826_v20, %v784_v0  ;;  %v1146_v9 = vclamps-f32 %v853_v37, 0.9999999  ;;  %v1885_v12 = vsel %vm780_vm10, %v781_v49, %v779_v6 }
 0x10a   : > { %v850_v34 = vmul.f32 %v822_v56, %v790_v5  ;;  %v1889_v3 = vsel %vm787_vm12, %v788_v30, %v786_v7  ;;  %v796_v17 = vmax.f32 %v1885_v12, 1e-15  ;;  %v851_v21 = vmul.f32 %v822_v56, %v791_v2 }
 0x10b   : > { %1263 = vrcp.f32 %v884_v1  ;;  %v885_v20 = vsub.f32 1.0, %v1146_v9  ;;  %v797_v22 = vmax.f32 %v1889_v3, 1e-15  ;;  %v770_v26 = vmul.f32 %v1262_v13, %v1833_v28 }
 0x10c   : > { %v1143_v36 = vclamps-f32 %v850_v34, 0.9999999  ;;  %v856_v24 = vmul.f32 %v849_v18, %v796_v17  ;;  %v1144_v31 = vclamps-f32 %v851_v21, 0.9999999  ;;  %v765_v10 = vsel %vm764_vm13, %v1830_v38, %v763_v39 }
 0x10d   : > { %1265 = vrcp.f32 %v885_v20  ;;  %v857_v40 = vmul.f32 %v849_v18, %v797_v22  ;;  %v1913_v56 = vsel %vm766_vm14, %v767_v25, %v765_v10  ;;  %v772_v57 = vsel %vm771_vm15, %v1833_v28, %v770_v26 }
 0x10e   : > { %v882_v27 = vsub.f32 1.0, %v1143_v36  ;;  %v883_v51 = vsub.f32 1.0, %v1144_v31  ;;  %v1149_v52 = vclamps-f32 %v856_v24, 0.9999999  ;;  %v1916_v46 = vsel %vm773_vm0, %v774_v53, %v772_v57 }
 0x10f   : > { %v1150_v11 = vclamps-f32 %v857_v40, 0.9999999  ;;  %v876_v48 = vadd.f32 1.0, %v1145_v35  ;;  %v794_v49 = vmax.f32 %v1913_v56, 1e-15  ;;  %v877_v63 = vadd.f32 1.0, %v1146_v9 }
 0x110   : > { %1267 = vrcp.f32 %v882_v27  ;;  %v888_v58 = vsub.f32 1.0, %v1149_v52  ;;  %v795_v55 = vmax.f32 %v1916_v46, 1e-15  ;;  %v874_v4 = vadd.f32 1.0, %v1143_v36  ;;  %v942_v36 = vpop.permute.xlu1 %941 }
 0x111   : > { %1269 = vrcp.f32 %v883_v51  ;;  %v889_v60 = vsub.f32 1.0, %v1150_v11  ;;  %v854_v38 = vmul.f32 %v840_v47, %v794_v49  ;;  %v875_v8 = vadd.f32 1.0, %v1144_v31 }
 0x112   : > { %1271 = vrcp.f32 %v888_v58  ;;  %v855_v28 = vmul.f32 %v840_v47, %v795_v55  ;;  %v880_v20 = vadd.f32 1.0, %v1149_v52  ;;  %v881_v21 = vadd.f32 1.0, %v1150_v11  ;;  %v933_v58 = vpop.permute.xlu0 %932 }
 0x113   : > { %1273 = vrcp.f32 %v889_v60  ;;  %v1147_v0 = vclamps-f32 %v854_v38, 0.9999999  ;;  %v947_v27 = vrot.slane %v942_v36, %v1682_v32  ;;  %v938_v12 = vrot.slane %v933_v58, %v1682_v32 }
 0x114   : > { %v1148_v37 = vclamps-f32 %v855_v28, 0.9999999 }
 0x115   : > { %v1264_v42 = vpop.eup %1263  ;;  %v886_v30 = vsub.f32 1.0, %v1147_v0  ;;  %v878_v41 = vadd.f32 1.0, %v1147_v0 }
 0x116   : > { %v895_v43 = vmul.f32 %v1264_v42, %v876_v48  ;;  %v887_v6 = vsub.f32 1.0, %v1148_v37 }
 0x117   : > { %v1266_v35 = vpop.eup %1265 }
 0x118   : > { %1275 = vlog2.f32 %v895_v43  ;;  %v897_v1 = vmul.f32 %v1266_v35, %v877_v63 }
 0x119   : > { %1277 = vrcp.f32 %v792_v45 }
 0x11a   : > { %v1268_v7 = vpop.eup %1267  ;;  %1279 = vlog2.f32 %v897_v1 }
 0x11b   : > { %v1270_v13 = vpop.eup %1269  ;;  %v891_v34 = vmul.f32 %v1268_v7, %v874_v4  ;;  %1281 = vrcp.f32 %v886_v30 }
 0x11c   : > { %v893_v18 = vmul.f32 %v1270_v13, %v875_v8  ;;  %1283 = vrcp.f32 %v887_v6  ;;  %v1272_v9 = vpop.eup %1271 }
 0x11d   : > { %1285 = vlog2.f32 %v891_v34  ;;  %v1274_v24 = vpop.eup %1273  ;;  %v903_v25 = vmul.f32 %v1272_v9, %v880_v20 }
 0x11e   : > { %1287 = vlog2.f32 %v893_v18  ;;  %v905_v50 = vmul.f32 %v1274_v24, %v881_v21 }
 0x11f   : > { %1289 = vrcp.f32 %v793_v29  ;;  %v879_v29 = vadd.f32 1.0, %v1148_v37 }
 0x120   : > { %1291 = vlog2.f32 %v903_v25 }
 0x121   : > { %1293 = vlog2.f32 %v905_v50 }
 0x122   : > { %v1276_v45 = vpop.eup %1275  ;;  %1295 = vrcp.f32 %v790_v5 }
 0x123   : > { %v911_v31 = vmul.f32 0.6931472, %v1276_v45  ;;  %v1278_v39 = vpop.eup %1277  ;;  %1297 = vrcp.f32 %v791_v2 }
 0x124   : > { %v1280_v40 = vpop.eup %1279  ;;  %1299 = vrcp.f32 %v796_v17  ;;  %v960_v17 = vpop.permute.xlu1 %959 }
 0x125   : > { %v924_v26 = vmul.f32 0.5, %v911_v31  ;;  %v1282_v59 = vpop.eup %1281  ;;  %v913_v51 = vmul.f32 0.6931472, %v1280_v40  ;;  %1301 = vrcp.f32 %v797_v22  ;;  %v965_v6 = vrot.slane %v960_v17, %v1682_v32 }
 0x126   : > { %v1284_v10 = vpop.eup %1283  ;;  %v899_v53 = vmul.f32 %v1282_v59, %v878_v41 }
 0x127   : > { %v968_v52 = vmul.f32 %v947_v27, %v924_v26  ;;  %v1286_v11 = vpop.eup %1285  ;;  %v901_v62 = vmul.f32 %v1284_v10, %v879_v29  ;;  %v925_v5 = vmul.f32 0.5, %v913_v51 }
 0x128   : > { %v1288_v54 = vpop.eup %1287  ;;  %1303 = vlog2.f32 %v899_v53  ;;  %v907_v2 = vmul.f32 0.6931472, %v1286_v11 }
 0x129   : > { %v976_v57 = vmul.f32 %v1278_v39, %v968_v52  ;;  %v1290_v47 = vpop.eup %1289  ;;  %1305 = vlog2.f32 %v901_v62  ;;  %v969_v48 = vmul.f32 %v947_v27, %v925_v5  ;;  %v909_v60 = vmul.f32 0.6931472, %v1288_v54 }
 0x12a   : > { %v1292_v42 = vpop.eup %1291  ;;  %v922_v43 = vmul.f32 0.5, %v907_v2  ;;  %1307 = vrcp.f32 %v794_v49 }
 0x12b   : > { %v1294_v38 = vpop.eup %1293  ;;  %v977_v28 = vmul.f32 %v1290_v47, %v969_v48  ;;  %v984_v3 = vmul.f32 %v976_v57, %v1779_v61  ;;  %v923_v22 = vmul.f32 0.5, %v909_v60  ;;  %v919_v63 = vmul.f32 0.6931472, %v1292_v42 }
 0x12c   : > { %v966_v0 = vmul.f32 %v938_v12, %v922_v43  ;;  %v921_v37 = vmul.f32 0.6931472, %v1294_v38  ;;  %v1296_v35 = vpop.eup %1295  ;;  %1309 = vrcp.f32 %v795_v55  ;;  %v951_v55 = vpop.permute.xlu0 %950 }
 0x12d   : > { %v985_v1 = vmul.f32 %v977_v28, %v1783_v14  ;;  %v967_v30 = vmul.f32 %v938_v12, %v923_v22  ;;  %v928_v4 = vmul.f32 0.5, %v919_v63  ;;  %v1298_v7 = vpop.eup %1297 }
 0x12e   : > { %v974_v8 = vmul.f32 %v1296_v35, %v966_v0  ;;  %v929_v13 = vmul.f32 0.5, %v921_v37  ;;  %v1300_v20 = vpop.eup %1299 }
 0x12f   : > { %v999_v61 = vcombine.low %v984_v3, %v985_v1  ;;  %v975_v34 = vmul.f32 %v1298_v7, %v967_v30  ;;  %v972_v18 = vmul.f32 %v965_v6, %v928_v4  ;;  %v1302_v21 = vpop.eup %1301 }
 0x130   : > { %v973_v9 = vmul.f32 %v965_v6, %v929_v13  ;;  %v982_v14 = vmul.f32 %v974_v8, %v1787_v33  ;;  %v956_v33 = vrot.slane %v951_v55, %v1682_v32 }
 0x131   : > { %1007 = vst [vmem:[%s1948_s21 + $0x8] sm:$0xff] %v999_v61  ;;  %v983_v56 = vmul.f32 %v975_v34, %v1793_v16  ;;  %v980_v49 = vmul.f32 %v1300_v20, %v972_v18 }
 0x132   : > { %v1304_v24 = vpop.eup %1303  ;;  %v981_v46 = vmul.f32 %v1302_v21, %v973_v9 }
 0x133   : > { %v1306_v25 = vpop.eup %1305  ;;  %v998_v50 = vcombine.low %v982_v14, %v983_v56  ;;  %v915_v45 = vmul.f32 0.6931472, %v1304_v24  ;;  %v988_v36 = vmul.f32 %v980_v49, %v1797_v15 }
 0x134   : > { %v989_v31 = vmul.f32 %v981_v46, %v1799_v19  ;;  %v917_v39 = vmul.f32 0.6931472, %v1306_v25  ;;  %v1308_v41 = vpop.eup %1307 }
 0x135   : > { %1006 = vst [vmem:[%s1948_s21] sm:$0xff] %v998_v50  ;;  %v926_v26 = vmul.f32 0.5, %v915_v45 }
 0x136   : > { %v1001_v16 = vcombine.low %v988_v36, %v989_v31  ;;  %v927_v27 = vmul.f32 0.5, %v917_v39  ;;  %v1310_v29 = vpop.eup %1309 }
 0x137   : > { %v970_v40 = vmul.f32 %v956_v33, %v926_v26 }
 0x138   : > { %1009 = vst [vmem:[%s1948_s21 + $0x18] sm:$0xff] %v1001_v16  ;;  %v971_v59 = vmul.f32 %v956_v33, %v927_v27 }
 0x139   : > { %v978_v51 = vmul.f32 %v1308_v41, %v970_v40 }
 0x13a   : > { %v979_v15 = vmul.f32 %v1310_v29, %v971_v59 }
 0x13b   : > { %v986_v19 = vmul.f32 %v978_v51, %v1805_v23 }
 0x13c   : > { %v987_v52 = vmul.f32 %v979_v15, %v1812_v44 }
 0x13e   : > { %v1000_v32 = vcombine.low %v986_v19, %v987_v52 }
 0x140   : > { %1008 = vst [vmem:[%s1948_s21 + $0x10] sm:$0xff] %v1000_v32 }
 0x141   : > { %1354 = shalt.err (!%p1351_p5)
}
 0x142   : > { %s1355_s6 = scalar_lea.hbm %s1965_s30, 512  ;;  %s1359_s10 = scalar_lea.hbm %s2020_s3, 1024 }
 0x143   : > { %p1356_p4 = scmp.ne.s32.totalorder %s1965_s30, %s1355_s6  ;;  %p1360_p12 = scmp.lt.u32.totalorder %s1965_s30, %s2020_s3 }
 0x144   : > { %p1361_p1 = scmp.lt.u32.totalorder %s1359_s10, %s1355_s6  ;;  %p1363_p8 = scmp.lt.u32.totalorder %s1355_s6, %s1965_s30 }
 0x145   : > { %p1357_p7 = pnand %p1356_p4, %p2028_p9 }
 0x146   : > { %p1362_p3 = por %p1361_p1, %p1360_p12 }
 0x147   : > { %p1358_p10 = pneg %p1357_p7 }
 0x148   : > { %p1364_p11 = por %p1363_p8, %p1362_p3 }
 0x14a   : > { %p1365_p0 = pnand %p1364_p11, %p1358_p10 }
 0x14c   : > { %1368 = shalt.err (!%p1365_p0)
}
 0x14d   : > { %s1430_s21 = smov 128   ;;  %s1431_s18 = smov 8  }
 0x14e   : > { %1160 = dma.vmem_to_hbm [thread:$0]  (%p2028_p9), %s1967_s28, 512, %s1965_s30, %s1011_s4, %s1430_s21, %s1430_s21, %s1431_s18  }
 0x14f PF: > { %s1041_s24 = sand.u32 1, %s1403_s12   ;;  %p2029_p6 = scmp.ne.s32.totalorder %s2025_s27, 0 }
 0x150   : > { %p2030_p13 = scmp.ge.s32.totalorder %s1423_s17, 2  ;;  %s1042_s29 = scalar_lea.sflag [#allocation4], %s1041_s24 }
 0x152   : > { %p1167_p2 = pnand %p2030_p13, %p2029_p6 }
 0x154   : > { %1398 = dma.done.wait (!%p1167_p2), %s1042_s29, 512  }
 0x155   : > { %1400 = vsyncadd (!%p1167_p2), %s1042_s29, 4294966784  ;;  %s19_s17 = sadd.s32 1, %s1423_s17   ;;  %s2031_s12 = smov %s1407_s13 }
 0x156   : > { %p16_p5 = scmp.ge.s32.totalorder %s19_s17, 4   ;;  %s2032_s13 = smov %s1411_s14 }
 0x157   : > { %s2033_s14 = smov %s1508_s26  ;;  %s2034_s15 = smov %s1419_s16 }
 0x158   : > { %s2035_s16 = smov %s2037_s20  ;;  %18 = sbr.rel (!%p16_p5) target bundleno = 6 (0x6), region = 81 }
 0x15f   :  { %1047 = vsyncpa [#allocation3], 1 }
 0x160   :  { %1049 = vsyncpa [#allocation3 + $0x1], 1 }
 0x161   :  { %1050 = vsyncpa [#allocation4], 1 }
 0x162   :  { %1052 = vsyncpa [#allocation4 + $0x1], 1 }

</bundles_post_ra>
